<compile_context>
chip_gen: v5e
topology: v5e:2x2
jax: 0.10.0
libtpu: 0.0.40
codegen_flags: <defaults>
</compile_context>

<pallas_src>
import functools

import jax
import jax.numpy as jnp
import numpy as np
from jax.experimental import pallas as pl
from jax.experimental.pallas import tpu as pltpu


def _scgate_kernel(x_ref, w1t_ref, b1_ref, w2t_ref, b2_ref, cw_ref, o_ref, *, K, H, W):
    # x_ref block: (TB, C, H*W) f32, lane-dense on the last axis.
    TB, C, HW = x_ref.shape
    P = (K - 1) // 2

    x = x_ref[...]                                   # (TB, C, HW)

    # ---------------- Pooling (feeds both gates) ----------------
    avg_pool = jnp.mean(x, axis=2)                   # (TB, C)  per-channel avg
    max_pool = jnp.max(x, axis=2)                    # (TB, C)  per-channel max
    ch_max = jnp.max(x, axis=1)                      # (TB, HW) per-pixel max over C
    ch_mean = jnp.mean(x, axis=1)                    # (TB, HW) per-pixel mean over C

    # ---------------- Channel gate: fused 2-branch MLP ----------------
    # mlp(avg) + mlp(max) == W2 @ relu(W1 @ [avg;max] + b1) summed over the two
    # rows, plus 2*b2 (bias applied once per branch in the original module).
    pooled = jnp.concatenate([avg_pool, max_pool], axis=0)           # (2*TB, C)
    h = jnp.dot(pooled, w1t_ref[...], preferred_element_type=jnp.float32) + b1_ref[...]
    h = jnp.maximum(h, 0.0)                                          # (2*TB, Cr)
    y = jnp.dot(h, w2t_ref[...], preferred_element_type=jnp.float32)  # (2*TB, C)
    ch_att = y[:TB] + y[TB:] + 2.0 * b2_ref[...]                     # (TB, C)
    ch_half = 0.5 * jax.nn.sigmoid(ch_att)                           # (TB, C)

    # ---------------- Spatial gate: 2->1 KxK conv on the flat H*W axis -----
    # Shifting by oi*W + oj along the flat axis reproduces a 2-D (oi, oj)
    # shift for every in-bounds position; the boundary masks supply the
    # zero padding (mask positions never wrap, so the roll is exact).
    p_idx = jax.lax.broadcasted_iota(jnp.int32, (TB, HW), 1)
    if (W & (W - 1)) == 0:                          # power-of-two fast path
        sbits = W.bit_length() - 1
        row = p_idx >> sbits
        col = p_idx & (W - 1)
    else:                                           # division-free general path
        rowf = jnp.floor((p_idx.astype(jnp.float32) + 0.5) / float(W))
        row = rowf.astype(jnp.int32)
        col = p_idx - W * row

    def edge_mask(idx, off, size):
        if off == 0:
            return None                              # interior tap: always valid
        if off < 0:
            return idx >= -off
        return idx < size - off

    row_ok = [edge_mask(row, di - P, H) for di in range(K)]
    col_ok = [edge_mask(col, dj - P, W) for dj in range(K)]

    maps = jnp.concatenate([ch_max, ch_mean], axis=0)                # (2*TB, HW)
    conv = jnp.zeros((TB, HW), jnp.float32)
    for di in range(K):
        for dj in range(K):
            oi, oj = di - P, dj - P
            s = (-(oi * W + oj)) % HW
            shifted = pltpu.roll(maps, shift=s, axis=1) if s else maps
            w_max = cw_ref[di * K + dj]              # conv weight, in-chan 0 (max map)
            w_mean = cw_ref[K * K + di * K + dj]     # conv weight, in-chan 1 (mean map)
            tap = w_max * shifted[:TB] + w_mean * shifted[TB:]
            rm, cm = row_ok[di], col_ok[dj]
            m = rm if cm is None else (cm if rm is None else rm & cm)
            conv = conv + (tap if m is None else jnp.where(m, tap, 0.0))
    sp_half = 0.5 * jax.nn.sigmoid(conv)                             # (TB, HW)

    # ---------------- Parallel combine (factored blend) ----------------
    # 0.5*x*ch + 0.5*x*sp == x * (0.5*ch + 0.5*sp): broadcast-add + one mul.
    gate = ch_half[:, :, None] + sp_half[:, None, :]                 # (TB, C, HW)
    o_ref[...] = (x_ref[...] * gate).astype(o_ref.dtype)


def spatial_channel_gate(x, w1, b1, w2, b2, conv_w, *, kernel_size, batch_tile=1):
    """x: (B, C, H, W) f32.  Torch-layout params:
       w1 (Cr, C), b1 (Cr,), w2 (C, Cr), b2 (C,), conv_w (1, 2, K, K)."""
    B, C, H, W = x.shape
    Cr = w1.shape[0]
    K = kernel_size
    HW = H * W
    TB = batch_tile
    assert B % TB == 0
    assert K % 2 == 1  # 'same' padding assumes odd kernel (matches PyTorch module)

    # Lane-dense layout: fold (H, W) into the trailing axis.
    x_flat = x.reshape(B, C, HW)

    # Pre-transpose MLP weights so the kernel does row-major (rows, C) matmuls.
    w1t = w1.T                     # (C, Cr)
    w2t = w2.T                     # (Cr, C)
    b1r = b1.reshape(1, Cr)
    b2r = b2.reshape(1, C)
    cw_flat = conv_w.reshape(-1)   # (2*K*K,) OIHW flattened -> SMEM scalars

    kernel = functools.partial(_scgate_kernel, K=K, H=H, W=W)

    out_flat = pl.pallas_call(
        kernel,
        out_shape=jax.ShapeDtypeStruct((B, C, HW), x.dtype),
        grid_spec=pltpu.PrefetchScalarGridSpec(
            num_scalar_prefetch=0,
            grid=(B // TB,),
            in_specs=[
                pl.BlockSpec((TB, C, HW), lambda b: (b, 0, 0)),
                pl.BlockSpec((C, Cr), lambda b: (0, 0)),
                pl.BlockSpec((1, Cr), lambda b: (0, 0)),
                pl.BlockSpec((Cr, C), lambda b: (0, 0)),
                pl.BlockSpec((1, C), lambda b: (0, 0)),
                pl.BlockSpec(memory_space=pltpu.MemorySpace.SMEM),
            ],
            out_specs=pl.BlockSpec((TB, C, HW), lambda b: (b, 0, 0)),
        ),
        compiler_params=pltpu.CompilerParams(
            dimension_semantics=("parallel",)),
    )(x_flat, w1t, b1r, w2t, b2r, cw_flat)
    return out_flat.reshape(B, C, H, W)


def reference(x, w1, b1, w2, b2, conv_w, *, kernel_size):
    """Pure-JAX reference mirroring the PyTorch forward (sigmoid, para, none)."""
    P = (kernel_size - 1) // 2

    # ChannelGate
    avg = x.mean(axis=(2, 3))
    mx = x.max(axis=(2, 3))

    def mlp(v):
        h = jnp.maximum(v @ w1.T + b1, 0.0)
        return h @ w2.T + b2

    ch_scale = jax.nn.sigmoid(mlp(avg) + mlp(mx))[:, :, None, None]
    x_channel = x * ch_scale

    # SpatialGate
    comp = jnp.stack([x.max(axis=1), x.mean(axis=1)], axis=1)  # (B,2,H,W)
    conv = jax.lax.conv_general_dilated(
        comp, conv_w, window_strides=(1, 1), padding=((P, P), (P, P)),
        dimension_numbers=("NCHW", "OIHW", "NCHW"))
    sp_scale = jax.nn.sigmoid(conv)                            # (B,1,H,W)
    x_spatial = x * sp_scale

    return 0.5 * x_channel + 0.5 * x_spatial


if __name__ == "__main__":
    B, C, H, W = 2, 32, 16, 16
    REDUCTION = 16
    Cr = C // REDUCTION
    K = 3

    key = jax.random.PRNGKey(0)
    kx, k1, k2, k3, k4, k5 = jax.random.split(key, 6)

    x = jax.random.normal(kx, (B, C, H, W), jnp.float32)
    w1 = jax.random.normal(k1, (Cr, C), jnp.float32) * 0.2      # Linear(C, C//r).weight
    b1 = jax.random.normal(k2, (Cr,), jnp.float32) * 0.1        # Linear(C, C//r).bias
    w2 = jax.random.normal(k3, (C, Cr), jnp.float32) * 0.2      # Linear(C//r, C).weight
    b2 = jax.random.normal(k4, (C,), jnp.float32) * 0.1         # Linear(C//r, C).bias
    conv_w = jax.random.normal(k5, (1, 2, K, K), jnp.float32) * 0.3  # Conv2d(2,1,K), bias=False

    out = spatial_channel_gate(x, w1, b1, w2, b2, conv_w, kernel_size=K)
    out = jax.block_until_ready(out)

    ref = reference(x, w1, b1, w2, b2, conv_w, kernel_size=K)
    np.testing.assert_allclose(np.asarray(out), np.asarray(ref), rtol=1e-5, atol=1e-5)

    print("KERNEL_OK")
</pallas_src>

<mosaic_0001>
module attributes {stable_mosaic.version = 11 : i64} {
  func.func @_scgate_kernel(%arg0: i32, %arg1: memref<1x32x256xf32, #tpu.memory_space<vmem>>, %arg2: memref<32x2xf32, #tpu.memory_space<vmem>>, %arg3: memref<1x2xf32, #tpu.memory_space<vmem>>, %arg4: memref<2x32xf32, #tpu.memory_space<vmem>>, %arg5: memref<1x32xf32, #tpu.memory_space<vmem>>, %arg6: memref<18xf32, #tpu.memory_space<smem>>, %arg7: memref<1x32x256xf32, #tpu.memory_space<vmem>>) attributes {dimension_semantics = [#tpu.dimension_semantics<parallel>], iteration_bounds = array<i64: 2>, scalar_prefetch = 0 : i64, scratch_operands = 0 : i64, tpu.core_type = #tpu.core_type<tc>, window_params = [{transform_indices = @transform_0, window_bounds = array<i64: 1, 32, 256>}, {pipeline_mode = #tpu.pipeline_mode<synchronous>, transform_indices = @transform_1, window_bounds = array<i64: 32, 2>}, {pipeline_mode = #tpu.pipeline_mode<synchronous>, transform_indices = @transform_2, window_bounds = array<i64: 1, 2>}, {pipeline_mode = #tpu.pipeline_mode<synchronous>, transform_indices = @transform_3, window_bounds = array<i64: 2, 32>}, {pipeline_mode = #tpu.pipeline_mode<synchronous>, transform_indices = @transform_4, window_bounds = array<i64: 1, 32>}, {transform_indices = @transform_5, window_bounds = array<i64: 18>}, {transform_indices = @transform_6, window_bounds = array<i64: 1, 32, 256>}]} {
    %c0 = arith.constant 0 : index
    %c0_0 = arith.constant 0 : index
    %c0_1 = arith.constant 0 : index
    %0 = vector.load %arg1[%c0, %c0_0, %c0_1] : memref<1x32x256xf32, #tpu.memory_space<vmem>>, vector<1x32x256xf32>
    %cst = arith.constant dense<0.000000e+00> : vector<1x32xf32>
    %1 = vector.multi_reduction <add>, %0, %cst [2] : vector<1x32x256xf32> to vector<1x32xf32>
    %cst_2 = arith.constant 2.560000e+02 : f32
    %2 = vector.broadcast %cst_2 : f32 to vector<1x32xf32>
    %3 = arith.divf %1, %2 : vector<1x32xf32>
    %cst_3 = arith.constant dense<0xFF800000> : vector<1x32xf32>
    %4 = vector.multi_reduction <maximumf>, %0, %cst_3 [2] : vector<1x32x256xf32> to vector<1x32xf32>
    %cst_4 = arith.constant dense<0xFF800000> : vector<1x256xf32>
    %5 = vector.multi_reduction <maximumf>, %0, %cst_4 [1] : vector<1x32x256xf32> to vector<1x256xf32>
    %cst_5 = arith.constant dense<0.000000e+00> : vector<1x256xf32>
    %6 = vector.multi_reduction <add>, %0, %cst_5 [1] : vector<1x32x256xf32> to vector<1x256xf32>
    %cst_6 = arith.constant 3.200000e+01 : f32
    %7 = vector.broadcast %cst_6 : f32 to vector<1x256xf32>
    %8 = arith.divf %6, %7 : vector<1x256xf32>
    %9 = tpu.concatenate %3, %4 in 0 : vector<1x32xf32>, vector<1x32xf32> -> vector<2x32xf32>
    %c0_7 = arith.constant 0 : index
    %c0_8 = arith.constant 0 : index
    %10 = vector.load %arg2[%c0_7, %c0_8] : memref<32x2xf32, #tpu.memory_space<vmem>>, vector<32x2xf32>
    %cst_9 = arith.constant dense<0.000000e+00> : vector<2x2xf32>
    %11 = tpu.matmul %9, %10, %cst_9 {dimension_numbers = #tpu.dot_dimension_numbers<[1], [0], [0], [1], [0, 0, 1, 1], [], []>} : vector<2x32xf32>, vector<32x2xf32>, vector<2x2xf32> -> vector<2x2xf32>
    %c0_10 = arith.constant 0 : index
    %c0_11 = arith.constant 0 : index
    %12 = vector.load %arg3[%c0_10, %c0_11] : memref<1x2xf32, #tpu.memory_space<vmem>>, vector<1x2xf32>
    %13 = vector.broadcast %12 : vector<1x2xf32> to vector<2x2xf32>
    %14 = arith.addf %11, %13 : vector<2x2xf32>
    %cst_12 = arith.constant 0.000000e+00 : f32
    %15 = vector.broadcast %cst_12 : f32 to vector<2x2xf32>
    %16 = arith.maximumf %14, %15 : vector<2x2xf32>
    %c0_13 = arith.constant 0 : index
    %c0_14 = arith.constant 0 : index
    %17 = vector.load %arg4[%c0_13, %c0_14] : memref<2x32xf32, #tpu.memory_space<vmem>>, vector<2x32xf32>
    %cst_15 = arith.constant dense<0.000000e+00> : vector<2x32xf32>
    %18 = tpu.matmul %16, %17, %cst_15 {dimension_numbers = #tpu.dot_dimension_numbers<[1], [0], [0], [1], [0, 0, 1, 1], [], []>} : vector<2x2xf32>, vector<2x32xf32>, vector<2x32xf32> -> vector<2x32xf32>
    %19 = vector.extract_strided_slice %18 {offsets = [0, 0], sizes = [1, 32], strides = [1, 1]} : vector<2x32xf32> to vector<1x32xf32>
    %20 = vector.extract_strided_slice %18 {offsets = [1, 0], sizes = [1, 32], strides = [1, 1]} : vector<2x32xf32> to vector<1x32xf32>
    %21 = arith.addf %19, %20 : vector<1x32xf32>
    %c0_16 = arith.constant 0 : index
    %c0_17 = arith.constant 0 : index
    %22 = vector.load %arg5[%c0_16, %c0_17] : memref<1x32xf32, #tpu.memory_space<vmem>>, vector<1x32xf32>
    %cst_18 = arith.constant 2.000000e+00 : f32
    %23 = vector.broadcast %cst_18 : f32 to vector<1x32xf32>
    %24 = arith.mulf %23, %22 : vector<1x32xf32>
    %25 = arith.addf %21, %24 : vector<1x32xf32>
    %26 = arith.negf %25 : vector<1x32xf32>
    %27 = math.exp %26 : vector<1x32xf32>
    %cst_19 = arith.constant 1.000000e+00 : f32
    %28 = vector.broadcast %cst_19 : f32 to vector<1x32xf32>
    %29 = arith.addf %28, %27 : vector<1x32xf32>
    %30 = arith.divf %28, %29 : vector<1x32xf32>
    %cst_20 = arith.constant 5.000000e-01 : f32
    %31 = vector.broadcast %cst_20 : f32 to vector<1x32xf32>
    %32 = arith.mulf %31, %30 : vector<1x32xf32>
    %33 = tpu.iota {dimensions = array<i32: 1>} : vector<1x256xi32>
    %c4_i32 = arith.constant 4 : i32
    %34 = vector.broadcast %c4_i32 : i32 to vector<1x256xi32>
    %35 = arith.shrsi %33, %34 : vector<1x256xi32>
    %c15_i32 = arith.constant 15 : i32
    %36 = vector.broadcast %c15_i32 : i32 to vector<1x256xi32>
    %37 = arith.andi %33, %36 : vector<1x256xi32>
    %c1_i32 = arith.constant 1 : i32
    %38 = vector.broadcast %c1_i32 : i32 to vector<1x256xi32>
    %39 = arith.cmpi sge, %35, %38 : vector<1x256xi32>
    %c15_i32_21 = arith.constant 15 : i32
    %40 = vector.broadcast %c15_i32_21 : i32 to vector<1x256xi32>
    %41 = arith.cmpi slt, %35, %40 : vector<1x256xi32>
    %c1_i32_22 = arith.constant 1 : i32
    %42 = vector.broadcast %c1_i32_22 : i32 to vector<1x256xi32>
    %43 = arith.cmpi sge, %37, %42 : vector<1x256xi32>
    %c15_i32_23 = arith.constant 15 : i32
    %44 = vector.broadcast %c15_i32_23 : i32 to vector<1x256xi32>
    %45 = arith.cmpi slt, %37, %44 : vector<1x256xi32>
    %46 = tpu.concatenate %5, %8 in 0 : vector<1x256xf32>, vector<1x256xf32> -> vector<2x256xf32>
    %cst_24 = arith.constant 0.000000e+00 : f32
    %47 = vector.broadcast %cst_24 : f32 to vector<1x256xf32>
    %c17_i32 = arith.constant 17 : i32
    %48 = tpu.dynamic_rotate %46 by %c17_i32 dim 1 : vector<2x256xf32>, i32 -> vector<2x256xf32>
    %c0_25 = arith.constant 0 : index
    %49 = memref.load %arg6[%c0_25] : memref<18xf32, #tpu.memory_space<smem>>
    %c9 = arith.constant 9 : index
    %50 = memref.load %arg6[%c9] : memref<18xf32, #tpu.memory_space<smem>>
    %51 = vector.extract_strided_slice %48 {offsets = [0, 0], sizes = [1, 256], strides = [1, 1]} : vector<2x256xf32> to vector<1x256xf32>
    %52 = vector.broadcast %49 : f32 to vector<1x256xf32>
    %53 = arith.mulf %52, %51 : vector<1x256xf32>
    %54 = vector.extract_strided_slice %48 {offsets = [1, 0], sizes = [1, 256], strides = [1, 1]} : vector<2x256xf32> to vector<1x256xf32>
    %55 = vector.broadcast %50 : f32 to vector<1x256xf32>
    %56 = arith.mulf %55, %54 : vector<1x256xf32>
    %57 = arith.addf %53, %56 : vector<1x256xf32>
    %58 = arith.andi %39, %43 : vector<1x256xi1>
    %cst_26 = arith.constant 0.000000e+00 : f32
    %59 = vector.broadcast %cst_26 : f32 to vector<1x256xf32>
    %60 = arith.select %58, %57, %59 : vector<1x256xi1>, vector<1x256xf32>
    %61 = arith.addf %47, %60 : vector<1x256xf32>
    %c16_i32 = arith.constant 16 : i32
    %62 = tpu.dynamic_rotate %46 by %c16_i32 dim 1 : vector<2x256xf32>, i32 -> vector<2x256xf32>
    %c1 = arith.constant 1 : index
    %63 = memref.load %arg6[%c1] : memref<18xf32, #tpu.memory_space<smem>>
    %c10 = arith.constant 10 : index
    %64 = memref.load %arg6[%c10] : memref<18xf32, #tpu.memory_space<smem>>
    %65 = vector.extract_strided_slice %62 {offsets = [0, 0], sizes = [1, 256], strides = [1, 1]} : vector<2x256xf32> to vector<1x256xf32>
    %66 = vector.broadcast %63 : f32 to vector<1x256xf32>
    %67 = arith.mulf %66, %65 : vector<1x256xf32>
    %68 = vector.extract_strided_slice %62 {offsets = [1, 0], sizes = [1, 256], strides = [1, 1]} : vector<2x256xf32> to vector<1x256xf32>
    %69 = vector.broadcast %64 : f32 to vector<1x256xf32>
    %70 = arith.mulf %69, %68 : vector<1x256xf32>
    %71 = arith.addf %67, %70 : vector<1x256xf32>
    %cst_27 = arith.constant 0.000000e+00 : f32
    %72 = vector.broadcast %cst_27 : f32 to vector<1x256xf32>
    %73 = arith.select %39, %71, %72 : vector<1x256xi1>, vector<1x256xf32>
    %74 = arith.addf %61, %73 : vector<1x256xf32>
    %c15_i32_28 = arith.constant 15 : i32
    %75 = tpu.dynamic_rotate %46 by %c15_i32_28 dim 1 : vector<2x256xf32>, i32 -> vector<2x256xf32>
    %c2 = arith.constant 2 : index
    %76 = memref.load %arg6[%c2] : memref<18xf32, #tpu.memory_space<smem>>
    %c11 = arith.constant 11 : index
    %77 = memref.load %arg6[%c11] : memref<18xf32, #tpu.memory_space<smem>>
    %78 = vector.extract_strided_slice %75 {offsets = [0, 0], sizes = [1, 256], strides = [1, 1]} : vector<2x256xf32> to vector<1x256xf32>
    %79 = vector.broadcast %76 : f32 to vector<1x256xf32>
    %80 = arith.mulf %79, %78 : vector<1x256xf32>
    %81 = vector.extract_strided_slice %75 {offsets = [1, 0], sizes = [1, 256], strides = [1, 1]} : vector<2x256xf32> to vector<1x256xf32>
    %82 = vector.broadcast %77 : f32 to vector<1x256xf32>
    %83 = arith.mulf %82, %81 : vector<1x256xf32>
    %84 = arith.addf %80, %83 : vector<1x256xf32>
    %85 = arith.andi %39, %45 : vector<1x256xi1>
    %cst_29 = arith.constant 0.000000e+00 : f32
    %86 = vector.broadcast %cst_29 : f32 to vector<1x256xf32>
    %87 = arith.select %85, %84, %86 : vector<1x256xi1>, vector<1x256xf32>
    %88 = arith.addf %74, %87 : vector<1x256xf32>
    %c1_i32_30 = arith.constant 1 : i32
    %89 = tpu.dynamic_rotate %46 by %c1_i32_30 dim 1 : vector<2x256xf32>, i32 -> vector<2x256xf32>
    %c3 = arith.constant 3 : index
    %90 = memref.load %arg6[%c3] : memref<18xf32, #tpu.memory_space<smem>>
    %c12 = arith.constant 12 : index
    %91 = memref.load %arg6[%c12] : memref<18xf32, #tpu.memory_space<smem>>
    %92 = vector.extract_strided_slice %89 {offsets = [0, 0], sizes = [1, 256], strides = [1, 1]} : vector<2x256xf32> to vector<1x256xf32>
    %93 = vector.broadcast %90 : f32 to vector<1x256xf32>
    %94 = arith.mulf %93, %92 : vector<1x256xf32>
    %95 = vector.extract_strided_slice %89 {offsets = [1, 0], sizes = [1, 256], strides = [1, 1]} : vector<2x256xf32> to vector<1x256xf32>
    %96 = vector.broadcast %91 : f32 to vector<1x256xf32>
    %97 = arith.mulf %96, %95 : vector<1x256xf32>
    %98 = arith.addf %94, %97 : vector<1x256xf32>
    %cst_31 = arith.constant 0.000000e+00 : f32
    %99 = vector.broadcast %cst_31 : f32 to vector<1x256xf32>
    %100 = arith.select %43, %98, %99 : vector<1x256xi1>, vector<1x256xf32>
    %101 = arith.addf %88, %100 : vector<1x256xf32>
    %c4 = arith.constant 4 : index
    %102 = memref.load %arg6[%c4] : memref<18xf32, #tpu.memory_space<smem>>
    %c13 = arith.constant 13 : index
    %103 = memref.load %arg6[%c13] : memref<18xf32, #tpu.memory_space<smem>>
    %104 = vector.extract_strided_slice %46 {offsets = [0, 0], sizes = [1, 256], strides = [1, 1]} : vector<2x256xf32> to vector<1x256xf32>
    %105 = vector.broadcast %102 : f32 to vector<1x256xf32>
    %106 = arith.mulf %105, %104 : vector<1x256xf32>
    %107 = vector.extract_strided_slice %46 {offsets = [1, 0], sizes = [1, 256], strides = [1, 1]} : vector<2x256xf32> to vector<1x256xf32>
    %108 = vector.broadcast %103 : f32 to vector<1x256xf32>
    %109 = arith.mulf %108, %107 : vector<1x256xf32>
    %110 = arith.addf %106, %109 : vector<1x256xf32>
    %111 = arith.addf %101, %110 : vector<1x256xf32>
    %c255_i32 = arith.constant 255 : i32
    %112 = tpu.dynamic_rotate %46 by %c255_i32 dim 1 : vector<2x256xf32>, i32 -> vector<2x256xf32>
    %c5 = arith.constant 5 : index
    %113 = memref.load %arg6[%c5] : memref<18xf32, #tpu.memory_space<smem>>
    %c14 = arith.constant 14 : index
    %114 = memref.load %arg6[%c14] : memref<18xf32, #tpu.memory_space<smem>>
    %115 = vector.extract_strided_slice %112 {offsets = [0, 0], sizes = [1, 256], strides = [1, 1]} : vector<2x256xf32> to vector<1x256xf32>
    %116 = vector.broadcast %113 : f32 to vector<1x256xf32>
    %117 = arith.mulf %116, %115 : vector<1x256xf32>
    %118 = vector.extract_strided_slice %112 {offsets = [1, 0], sizes = [1, 256], strides = [1, 1]} : vector<2x256xf32> to vector<1x256xf32>
    %119 = vector.broadcast %114 : f32 to vector<1x256xf32>
    %120 = arith.mulf %119, %118 : vector<1x256xf32>
    %121 = arith.addf %117, %120 : vector<1x256xf32>
    %cst_32 = arith.constant 0.000000e+00 : f32
    %122 = vector.broadcast %cst_32 : f32 to vector<1x256xf32>
    %123 = arith.select %45, %121, %122 : vector<1x256xi1>, vector<1x256xf32>
    %124 = arith.addf %111, %123 : vector<1x256xf32>
    %c241_i32 = arith.constant 241 : i32
    %125 = tpu.dynamic_rotate %46 by %c241_i32 dim 1 : vector<2x256xf32>, i32 -> vector<2x256xf32>
    %c6 = arith.constant 6 : index
    %126 = memref.load %arg6[%c6] : memref<18xf32, #tpu.memory_space<smem>>
    %c15 = arith.constant 15 : index
    %127 = memref.load %arg6[%c15] : memref<18xf32, #tpu.memory_space<smem>>
    %128 = vector.extract_strided_slice %125 {offsets = [0, 0], sizes = [1, 256], strides = [1, 1]} : vector<2x256xf32> to vector<1x256xf32>
    %129 = vector.broadcast %126 : f32 to vector<1x256xf32>
    %130 = arith.mulf %129, %128 : vector<1x256xf32>
    %131 = vector.extract_strided_slice %125 {offsets = [1, 0], sizes = [1, 256], strides = [1, 1]} : vector<2x256xf32> to vector<1x256xf32>
    %132 = vector.broadcast %127 : f32 to vector<1x256xf32>
    %133 = arith.mulf %132, %131 : vector<1x256xf32>
    %134 = arith.addf %130, %133 : vector<1x256xf32>
    %135 = arith.andi %41, %43 : vector<1x256xi1>
    %cst_33 = arith.constant 0.000000e+00 : f32
    %136 = vector.broadcast %cst_33 : f32 to vector<1x256xf32>
    %137 = arith.select %135, %134, %136 : vector<1x256xi1>, vector<1x256xf32>
    %138 = arith.addf %124, %137 : vector<1x256xf32>
    %c240_i32 = arith.constant 240 : i32
    %139 = tpu.dynamic_rotate %46 by %c240_i32 dim 1 : vector<2x256xf32>, i32 -> vector<2x256xf32>
    %c7 = arith.constant 7 : index
    %140 = memref.load %arg6[%c7] : memref<18xf32, #tpu.memory_space<smem>>
    %c16 = arith.constant 16 : index
    %141 = memref.load %arg6[%c16] : memref<18xf32, #tpu.memory_space<smem>>
    %142 = vector.extract_strided_slice %139 {offsets = [0, 0], sizes = [1, 256], strides = [1, 1]} : vector<2x256xf32> to vector<1x256xf32>
    %143 = vector.broadcast %140 : f32 to vector<1x256xf32>
    %144 = arith.mulf %143, %142 : vector<1x256xf32>
    %145 = vector.extract_strided_slice %139 {offsets = [1, 0], sizes = [1, 256], strides = [1, 1]} : vector<2x256xf32> to vector<1x256xf32>
    %146 = vector.broadcast %141 : f32 to vector<1x256xf32>
    %147 = arith.mulf %146, %145 : vector<1x256xf32>
    %148 = arith.addf %144, %147 : vector<1x256xf32>
    %cst_34 = arith.constant 0.000000e+00 : f32
    %149 = vector.broadcast %cst_34 : f32 to vector<1x256xf32>
    %150 = arith.select %41, %148, %149 : vector<1x256xi1>, vector<1x256xf32>
    %151 = arith.addf %138, %150 : vector<1x256xf32>
    %c239_i32 = arith.constant 239 : i32
    %152 = tpu.dynamic_rotate %46 by %c239_i32 dim 1 : vector<2x256xf32>, i32 -> vector<2x256xf32>
    %c8 = arith.constant 8 : index
    %153 = memref.load %arg6[%c8] : memref<18xf32, #tpu.memory_space<smem>>
    %c17 = arith.constant 17 : index
    %154 = memref.load %arg6[%c17] : memref<18xf32, #tpu.memory_space<smem>>
    %155 = vector.extract_strided_slice %152 {offsets = [0, 0], sizes = [1, 256], strides = [1, 1]} : vector<2x256xf32> to vector<1x256xf32>
    %156 = vector.broadcast %153 : f32 to vector<1x256xf32>
    %157 = arith.mulf %156, %155 : vector<1x256xf32>
    %158 = vector.extract_strided_slice %152 {offsets = [1, 0], sizes = [1, 256], strides = [1, 1]} : vector<2x256xf32> to vector<1x256xf32>
    %159 = vector.broadcast %154 : f32 to vector<1x256xf32>
    %160 = arith.mulf %159, %158 : vector<1x256xf32>
    %161 = arith.addf %157, %160 : vector<1x256xf32>
    %162 = arith.andi %41, %45 : vector<1x256xi1>
    %cst_35 = arith.constant 0.000000e+00 : f32
    %163 = vector.broadcast %cst_35 : f32 to vector<1x256xf32>
    %164 = arith.select %162, %161, %163 : vector<1x256xi1>, vector<1x256xf32>
    %165 = arith.addf %151, %164 : vector<1x256xf32>
    %166 = arith.negf %165 : vector<1x256xf32>
    %167 = math.exp %166 : vector<1x256xf32>
    %cst_36 = arith.constant 1.000000e+00 : f32
    %168 = vector.broadcast %cst_36 : f32 to vector<1x256xf32>
    %169 = arith.addf %168, %167 : vector<1x256xf32>
    %170 = arith.divf %168, %169 : vector<1x256xf32>
    %cst_37 = arith.constant 5.000000e-01 : f32
    %171 = vector.broadcast %cst_37 : f32 to vector<1x256xf32>
    %172 = arith.mulf %171, %170 : vector<1x256xf32>
    %173 = vector.shape_cast %32 : vector<1x32xf32> to vector<1x32x1xf32>
    %174 = vector.shape_cast %172 : vector<1x256xf32> to vector<1x1x256xf32>
    %175 = vector.broadcast %173 : vector<1x32x1xf32> to vector<1x32x256xf32>
    %176 = vector.broadcast %174 : vector<1x1x256xf32> to vector<1x32x256xf32>
    %177 = arith.addf %175, %176 : vector<1x32x256xf32>
    %c0_38 = arith.constant 0 : index
    %c0_39 = arith.constant 0 : index
    %c0_40 = arith.constant 0 : index
    %178 = vector.load %arg1[%c0_38, %c0_39, %c0_40] : memref<1x32x256xf32, #tpu.memory_space<vmem>>, vector<1x32x256xf32>
    %179 = arith.mulf %178, %177 : vector<1x32x256xf32>
    %c0_41 = arith.constant 0 : index
    %c0_42 = arith.constant 0 : index
    %c0_43 = arith.constant 0 : index
    %180 = vector.load %arg7[%c0_41, %c0_42, %c0_43] : memref<1x32x256xf32, #tpu.memory_space<vmem>>, vector<1x32x256xf32>
    tpu.vector_store %arg7[%c0_41, %c0_42, %c0_43], %179 {strides = array<i32>} : memref<1x32x256xf32, #tpu.memory_space<vmem>>, vector<1x32x256xf32>,
    return
  }
  func.func @transform_0(%arg0: i32) -> (i32, i32, i32) {
    %c0_i32 = arith.constant 0 : i32
    %c0_i32_0 = arith.constant 0 : i32
    %c0_i32_1 = arith.constant 0 : i32
    return %arg0, %c0_i32, %c0_i32_0 : i32, i32, i32
  }
  func.func @transform_1(%arg0: i32) -> (i32, i32) {
    %c0_i32 = arith.constant 0 : i32
    %c0_i32_0 = arith.constant 0 : i32
    %c0_i32_1 = arith.constant 0 : i32
    return %c0_i32, %c0_i32_0 : i32, i32
  }
  func.func @transform_2(%arg0: i32) -> (i32, i32) {
    %c0_i32 = arith.constant 0 : i32
    %c0_i32_0 = arith.constant 0 : i32
    %c0_i32_1 = arith.constant 0 : i32
    return %c0_i32, %c0_i32_0 : i32, i32
  }
  func.func @transform_3(%arg0: i32) -> (i32, i32) {
    %c0_i32 = arith.constant 0 : i32
    %c0_i32_0 = arith.constant 0 : i32
    %c0_i32_1 = arith.constant 0 : i32
    return %c0_i32, %c0_i32_0 : i32, i32
  }
  func.func @transform_4(%arg0: i32) -> (i32, i32) {
    %c0_i32 = arith.constant 0 : i32
    %c0_i32_0 = arith.constant 0 : i32
    %c0_i32_1 = arith.constant 0 : i32
    return %c0_i32, %c0_i32_0 : i32, i32
  }
  func.func @transform_5(%arg0: i32) -> i32 {
    %c0_i32 = arith.constant 0 : i32
    %c0_i32_0 = arith.constant 0 : i32
    return %c0_i32 : i32
  }
  func.func @transform_6(%arg0: i32) -> (i32, i32, i32) {
    %c0_i32 = arith.constant 0 : i32
    %c0_i32_0 = arith.constant 0 : i32
    %c0_i32_1 = arith.constant 0 : i32
    return %arg0, %c0_i32, %c0_i32_0 : i32, i32, i32
  }
}

</mosaic_0001>

<bundles_post_ra>
// kernel: tpu_custom_call.1
= control target key start
LH: loop header
LB: loop body
LE: loop exit
PB: predicated region body
PF: predicated region fallthrough
CT: control target
= control target key end

     0   :  { %s1732_s0 = inlined_call_operand.hbm [shape: f32[2,32,256], index: 0, kind: input, shape index: {}]   ;;  %s1733_s1 = inlined_call_operand.vmem [shape: f32[32,2], index: 1, kind: input, shape index: {}]   ;;  %s1734_s2 = inlined_call_operand.vmem [shape: f32[1,2], index: 2, kind: input, shape index: {}]   ;;  %s1735_s3 = inlined_call_operand.vmem [shape: f32[2,32], index: 3, kind: input, shape index: {}]   ;;  %s1736_s4 = inlined_call_operand.vmem [shape: f32[1,32], index: 4, kind: input, shape index: {}]   ;;  %s1737_s5 = inlined_call_operand.vmem [shape: f32[18], index: 5, kind: input, shape index: {}]   ;;  %s1738_s6 = inlined_call_operand.hbm [shape: f32[2,32,256], index: 6, kind: output, shape index: {}]  }
   0x1   :  { %1740 = sst [smem:[#allocation13_spill]] %s1737_s5 }
   0x2   :  { %11 = vsyncpa [#allocation3], 0 }
   0x3   :  { %13 = vsyncpa [#allocation3 + $0x1], 0 }
   0x4   :  { %14 = vsyncpa [#allocation5], 0 }
   0x5   :  { %15 = vsyncpa [#allocation4], 0 }
   0x6   :  { %17 = vsyncpa [#allocation4 + $0x1], 0  ;;  %s1245_s21 = smov 0   ;;  %s1247_s22 = smov 0  }
   0x7   :  { %s1249_s23 = smov 0   ;;  %s1251_s24 = smov 0  }
   0x8 LB: > { %1741 = sst [smem:[#allocation11_spill]] %s1190_s23  ;;  %s1266_s25 = sadd.s32 4294967295, %s1194_s24   ;;  %s1194_s24 = sphi %s1251_s24, %s1771_s24   ;;  %s1190_s23 = sphi %s1249_s23, %s1768_s23   ;;  %s1186_s22 = sphi %s1247_s22, %s1770_s22   ;;  %s1182_s21 = sphi %s1245_s21, %s1769_s21  }
   0x9   : > { %s946_s26 = sadd.s32 4294967294, %s1194_s24   ;;  %s1270_s27 = sadd.s32 1, %s1194_s24  }
   0xa   : > { %s30_s28 = sadd.s32 1, %s1190_s23  ;;  %s27_s29 = ssub.s32 %s1194_s24, %s1270_s27 }
   0xb   : > { %p37_p0 = scmp.ne.s32.totalorder %s1190_s23, %s1186_s22  ;;  %p28_p1 = scmp.eq.s32.totalorder %s27_s29, 0 }
   0xc   : > { %p38_p2 = scmp.eq.s32.totalorder %s1194_s24, 0  ;;  %p43_p3 = scmp.ne.s32.totalorder %s1186_s22, %s1182_s21 }
   0xd   : > { %p44_p4 = scmp.eq.s32.totalorder %s1266_s25, 0  ;;  %p172_p7 = scmp.eq.s32.totalorder %s1266_s25, 1 }
   0xe   : > { %s1282_s30 = scalar_select %p28_p1, %s1190_s23, %s30_s28  }
   0xf   : > { %p1284_p5 = por %p38_p2, %p37_p0  ;;  %p1290_p6 = por %p44_p4, %p43_p3 }
  0x10   : > { %1742 = sst [smem:[#allocation12_spill]] %s1282_s30  ;;  %p178_p8 = scmp.eq.s32.totalorder %s946_s26, 1 }
  0x11   : > { %p947_p9 = scmp.ge.s32.totalorder %s1194_s24, 1  ;;  %p185_p10 = scmp.lt.s32.totalorder %s1194_s24, 3 }
  0x12   : > { %p1297_p11 = por %p172_p7, %p37_p0  ;;  %p1301_p12 = por %p178_p8, %p43_p3 }
  0x13   : > { %p1305_p13 = pnand %p947_p9, %p185_p10  ;;  %s1748_s5 = sld [smem:[#allocation13_spill]] }
  0x14   : > { %p1008_p2 = scmp.lt.s32.totalorder %s1194_s24, 2  ;;  %s220_s15 = sand.u32 1, %s1190_s23  }
  0x15   : > { %p995_p1 = pneg %p1305_p13  ;;  %s950_s17 = sshll.u32 %s220_s15, 6 }
  0x16   : > { %p1321_p3 = pnand %p1008_p2, %p1284_p5  ;;  %s1196_s18 = smov [#allocation6]  }
  0x17   : > { %p996_p7 = pnand %p995_p1, %p44_p4  ;;  %s985_s19 = sshll.u32 %s1194_s24, 6 }
  0x18   : > { %s224_s20 = scalar_lea.vmem [#allocation2], %s950_s17  ;;  %s229_s12 = scalar_lea.hbm %s1732_s0, %s985_s19 }
  0x19   : > { %s209_s14 = sshll.u32 %s1748_s5, 4  ;;  %s232_s26 = sshll.u32 %s224_s20, 4  ;;  %s210_s14 = int_to_ptr.vmem [resolvable:$true] %s209_s14  ;;  %s233_s26 = int_to_ptr.vmem [resolvable:$true] %s232_s26 }
  0x1a   : > { %998 = dma.vmem_to_smem (!%p996_p7), %s210_s14, 16, %s1196_s18, [#allocation5]  }
  0x1b   : > { %s230_s13 = sshll.u32 %s229_s12, 4  ;;  %s221_s5 = scalar_lea.sflag [#allocation3], %s220_s15  ;;  %s231_s13 = int_to_ptr.hbm [resolvable:$true] %s230_s13 }
  0x1c   : > { %s1094_s7 = sshra.s32 %s231_s13, 4  ;;  %p1098_p8 = pneg %p1321_p3  ;;  %s1095_s7 = int_to_ptr.hbm [resolvable:$true] %s1094_s7 }
  0x1d   : > { %s1096_s30 = scalar_lea.hbm %s1095_s7, 64  ;;  %s1101_s17 = scalar_lea.hbm %s1732_s0, 128 }
  0x1e   : > { %p1097_p5 = scmp.ne.s32.totalorder %s1095_s7, %s1096_s30  ;;  %p1102_p1 = scmp.lt.s32.totalorder %s1095_s7, %s1732_s0 }
  0x1f   : > { %p1103_p2 = scmp.lt.s32.totalorder %s1101_s17, %s1096_s30 }
  0x20   : > { %p1099_p9 = pnand %p1098_p8, %p1097_p5 }
  0x21   : > { %p1104_p7 = por %p1103_p2, %p1102_p1 }
  0x22   : > { %p1100_p10 = pneg %p1099_p9 }
  0x24   : > { %p1105_p0 = pnand %p1104_p7, %p1100_p10 }
  0x26   : > { %1108 = shalt.err (!%p1105_p0)
}
  0x27   : > { %s1197_s15 = smov 256   ;;  %s1198_s19 = smov 16  }
  0x28   : > { %1002 = dma.hbm_to_vmem [thread:$0]  (!%p1321_p3), %s231_s13, 1024, %s233_s26, %s221_s5, %s1197_s15, %s1197_s15, %s1198_s19  }
  0x29   : > { %244 = sbr.rel (%p1305_p13) target bundleno = 611 (0x263), region = 44  ;;  %s1342_s28 = sand.u32 (!%p1305_p13), 1, %s1186_s22  }
  0x2a   : > { %s954_s23 = sshll.u32 (!%p1305_p13), %s1342_s28, 6  ;;  %s247_s30 = scalar_lea.sflag (!%p1305_p13), [#allocation3], %s1342_s28 }
  0x2b   : > { %s250_s29 = scalar_lea.vmem (!%p1305_p13), [#allocation2], %s954_s23 }
  0x2e   : > { %1169 = dma.done.wait (%p1290_p6), %s247_s30, 1024  }
  0x2f   : > { %1171 = vsyncadd (%p1290_p6), %s247_s30, 4294966272 }
  0x30   : > { %1173 = dma.done.wait (%p44_p4), [#allocation5], 16  }
  0x31   : > { %1175 = vsyncadd (%p44_p4), [#allocation5], 4294967280 }
  0x32   : > { %261 = sfence }
  0x33   : > { %v1356_v0 = vld [vmem:[%s250_s29] sm:$0xff]  ;;  %v1358_v1 = vld [vmem:[%s250_s29 + $0x8] sm:$0xff]  ;;  %v1370_v7 = vld [vmem:[%s250_s29 + $0x10] sm:$0xff]  ;;  %v1199_v16 = vmov 256.0   ;;  %v1200_v33 = vmov 32.0   ;;  %v378_v53 = vlaneseq  ;;  %vm383_vm1 = vcmask 130112  }
  0x34   : > { %v1360_v2 = vld [vmem:[%s250_s29 + $0x20] sm:$0xff]  ;;  %v317_v3 = vmax.f32 %v1356_v0, %v1358_v1  ;;  %v294_v4 = vadd.f32 %v1358_v1, %v1356_v0  ;;  %v1366_v5 = vld [vmem:[%s250_s29 + $0x28] sm:$0xff]  ;;  %v1372_v8 = vld [vmem:[%s250_s29 + $0x18] sm:$0xff]  ;;  %1063 = vrcp.f32 %v1199_v16  ;;  %v347_v17 = vadd.f32 %v1370_v7, %v1356_v0  ;;  %s1201_s14 = smov 17   ;;  %s1202_s18 = smov 16  }
  0x35   : > { %v300_v6 = vadd.f32 %v1366_v5, %v1360_v2  ;;  %v1374_v9 = vld [vmem:[%s250_s29 + $0x30] sm:$0xff]  ;;  %v1376_v10 = vld [vmem:[%s250_s29 + $0x38] sm:$0xff]  ;;  %v320_v11 = vmax.f32 %v1370_v7, %v1372_v8  ;;  %v297_v12 = vadd.f32 %v1372_v8, %v1370_v7  ;;  %v323_v14 = vmax.f32 %v1360_v2, %v1366_v5  ;;  %v409_v24 = vld [vmem:[%s1733_s1 + $0x8] sm:$0xff]  ;;  %s1203_s17 = smov 15   ;;  %s1204_s20 = smov 1  }
  0x36   : > { %318 = vmax.xlane.f32.xlu2 %v317_v3  ;;  %295 = vadd.xlane.f32.xlu0 %v294_v4  ;;  %v303_v13 = vadd.f32 %v1376_v10, %v1374_v9  ;;  %v326_v15 = vmax.f32 %v1374_v9, %v1376_v10  ;;  %v411_v18 = vld [vmem:[%s1733_s1 + $0x18] sm:$0xff]  ;;  %v356_v19 = vadd.f32 %v1372_v8, %v1358_v1  ;;  %v410_v20 = vld [vmem:[%s1733_s1 + $0x10] sm:$0xff]  ;;  %v408_v25 = vld [vmem:[%s1733_s1] sm:$0xff]  ;;  %1065 = vrcp.f32 %v1200_v33  ;;  %s1205_s15 = smov 127   ;;  %s1206_s19 = smov 113  }
  0x37   : > { %301 = vadd.xlane.f32.xlu1 %v300_v6  ;;  %432 = vmatpush.msra.mxu0 %v411_v18  ;;  %v348_v21 = vadd.f32 %v347_v17, %v1360_v2  ;;  %v329_v26 = vmax.f32 %v1356_v0, %v1360_v2  ;;  %v338_v27 = vmax.f32 %v1358_v1, %v1366_v5  ;;  %v1417_v60 = vand.u32 127, %v378_v53  ;;  %s1207_s30 = smov 112   ;;  %s1208_s29 = smov 111  }
  0x38   : > { %v357_v23 = vadd.f32 %v356_v19, %v1366_v5  ;;  %v330_v28 = vmax.f32 %v1370_v7, %v1374_v9  ;;  %v339_v29 = vmax.f32 %v1372_v8, %v1376_v10  ;;  %vm387_vm3 = vcmask 195712   ;;  %s961_s13 = sld [smem:[#allocation6 + $0x9]] }
  0x39   : > { %433 = vmatpush.msra.mxu0 %v410_v20  ;;  %v349_v30 = vadd.f32 %v348_v21, %v1374_v9  ;;  %v381_v3 = vadd.s32 4294967288, %v1417_v60  ;;  %vm391_vm4 = vcmask 261312   ;;  %vm406_vm5 = vcmask 1040384   ;;  %s1468_s7 = sld [smem:[#allocation6 + $0xa]] }
  0x3a   : > { %v1064_v22 = vpop.eup %1063  ;;  %v358_v32 = vadd.f32 %v357_v23, %v1376_v10  ;;  %v331_v34 = vmax.f32 %v329_v26, %v330_v28  ;;  %v340_v35 = vmax.f32 %v338_v27, %v339_v29  ;;  %vm416_vm6 = vcmask 261120   ;;  %s1542_s5 = sld [smem:[#allocation6 + $0x4]] }
  0x3b   : > { %434 = vmatpush.msra.mxu0 %v409_v24  ;;  %v307_v31 = vmul.f32 256.0, %v1064_v22  ;;  %v350_v36 = vrot.slane %v349_v30, 4  ;;  %vm311_vm0 = vweird.f32 %v1064_v22  ;;  %vm446_vm7 = vcmask 1041408   ;;  %s1547_s8 = sld [smem:[#allocation6 + $0xe]] }
  0x3c   : > { %v359_v38 = vrot.slane %v358_v32, 4  ;;  %v1066_v39 = vpop.eup %1065  ;;  %v332_v42 = vrot.slane %v331_v34, 4  ;;  %v341_v43 = vrot.slane %v340_v35, 4  ;;  %vm442_vm8 = vcmask 15360   ;;  %s1560_s11 = sld [smem:[#allocation6 + $0x5]] }
  0x3d   : > { %435 = vmatpush.msra.mxu0 %v408_v25  ;;  %v308_v37 = vsub.f32 1.0, %v307_v31  ;;  %v351_v40 = vadd.f32 %v350_v36, %v349_v30  ;;  %v366_v45 = vmul.f32 32.0, %v1066_v39  ;;  %vm370_vm2 = vweird.f32 %v1066_v39  ;;  %s1575_s16 = sld [smem:[#allocation6 + $0xf]] }
  0x3e   : > { %321 = vmax.xlane.f32.xlu2 %v320_v11  ;;  %298 = vadd.xlane.f32.xlu0 %v297_v12  ;;  %v360_v44 = vadd.f32 %v359_v38, %v358_v32  ;;  %v333_v50 = vmax.f32 %v331_v34, %v332_v42  ;;  %v342_v51 = vmax.f32 %v340_v35, %v341_v43  ;;  %vm516_vm9 = vcmp.lt.s32.totalorder %v1417_v60, 17  ;;  %s1600_s26 = sld [smem:[#allocation6 + $0x6]] }
  0x3f   : > { %304 = vadd.xlane.f32.xlu1 %v303_v13  ;;  %v309_v41 = vmul.f32 %v1064_v22, %v308_v37  ;;  %v352_v52 = vrot.slane %v351_v40, 2  ;;  %v367_v55 = vsub.f32 1.0, %v366_v45  ;;  %vm545_vm10 = vcmp.lt.s32.totalorder %v1417_v60, 16  ;;  %s1610_s12 = sld [smem:[#allocation6 + $0x10]] }
  0x40   : > { %v361_v54 = vrot.slane %v360_v44, 2  ;;  %v334_v57 = vrot.slane %v333_v50, 2  ;;  %v343_v58 = vrot.slane %v342_v51, 2  ;;  %vm572_vm13 = vcmp.lt.s32.totalorder %v1417_v60, 15 }
  0x41   : > { %v310_v48 = vadd.f32 %v1064_v22, %v309_v41  ;;  %v353_v59 = vadd.f32 %v352_v52, %v351_v40  ;;  %v368_v62 = vmul.f32 %v1066_v39, %v367_v55 }
  0x42   : > { %v362_v61 = vadd.f32 %v361_v54, %v360_v44  ;;  %v335_v12 = vmax.f32 %v333_v50, %v334_v57  ;;  %v344_v13 = vmax.f32 %v342_v51, %v343_v58  ;;  %v441_v50 = vld [vmem:[%s1735_s3] sm:$0x3] }
  0x43   : > { %v312_v56 = vsel %vm311_vm0, %v1064_v22, %v310_v48  ;;  %v369_v20 = vadd.f32 %v1066_v39, %v368_v62  ;;  %v389_v22 = vadd.s32 4294967272, %v1417_v60  ;;  %958 = vmatpush.msk.msra.mxu1 %vm446_vm7, %v441_v50  ;;  %v1062_v51 = vld [vmem:[%s1734_s2] ss:$0 sm:$0xff]  ;;  %vm601_vm0 = vcmp.lt.s32.totalorder %v1417_v60, 1 }
  0x44   : > { %v363_v16 = vrot.slane %v362_v61, 1  ;;  %v336_v24 = vrot.slane %v335_v12, 1  ;;  %v345_v25 = vrot.slane %v344_v13, 1 }
  0x45   : > { %v371_v32 = vsel %vm370_vm2, %v1066_v39, %v369_v20  ;;  %v524_v20 = vstv %s961_s13  ;;  %s1624_s13 = sld [smem:[#allocation6 + $0x7]] }
  0x46   : > { %324 = vmax.xlane.f32.xlu0 %v323_v14  ;;  %v354_v14 = vrot.slane %v353_v59, 1  ;;  %v364_v30 = vadd.f32 %v363_v16, %v362_v61  ;;  %v337_v37 = vmax.f32 %v335_v12, %v336_v24  ;;  %v346_v38 = vmax.f32 %v344_v13, %v345_v25 }
  0x47   : > { %327 = vmax.xlane.f32.xlu1 %v326_v15  ;;  %v385_v15 = vadd.s32 4294967280, %v1417_v60  ;;  %v1475_v16 = vadd.s32 128, %v1417_v60 }
  0x48   : > { %v355_v26 = vadd.f32 %v354_v14, %v353_v59  ;;  %v373_v44 = vmul.f32 %v371_v32, %v364_v30  ;;  %v474_v59 = vld [vmem:[%s1736_s4] sm:$0x1] }
  0x4a   : > { %v372_v43 = vmul.f32 %v371_v32, %v355_v26  ;;  %v501_v26 = vand.u32 15, %v1475_v16 }
  0x4c   : > { %v1430_v48 = vsel %vm406_vm5, %v337_v37, %v372_v43  ;;  %vm1517_vm15 = vcmp.ge.s32.totalorder %v501_v26, 1 }
  0x56   : > { %512 = vrot.lane.b32.xlu2 %v1430_v48, %s1201_s14 }
  0x60   : > { %541 = vrot.lane.b32.xlu1 %v1430_v48, %s1202_s18 }
  0x68   : > { %597 = vrot.lane.b32.xlu1 %v1430_v48, %s1204_s20 }
  0xa9   : > { %v296_v46 = vpop.xlane.xlu0 %295  ;;  %v319_v47 = vpop.xlane.xlu2 %318 }
  0xaa   : > { %v302_v49 = vpop.xlane.xlu1 %301  ;;  %v313_v63 = vmul.f32 %v312_v56, %v296_v46  ;;  %v398_v27 = vperm.slane %v319_v47, %v1417_v60 }
  0xab   : > { %v315_v17 = vmul.f32 %v312_v56, %v302_v49  ;;  %v1433_v49 = vsel %vm406_vm5, %v346_v38, %v373_v44 }
  0xac   : > { %v380_v21 = vperm.slane %v313_v63, %v1417_v60  ;;  %514 = vrot.lane.b32.xlu0 %v1433_v49, %s1201_s14  ;;  %543 = vrot.lane.b32.xlu2 %v1433_v49, %s1202_s18  ;;  %s1470_s14 = sld [smem:[#allocation6]] }
  0xad   : > { %v386_v31 = vperm.slane %v315_v17, %v385_v15  ;;  %644 = vrot.lane.b32.xlu1 %v1433_v49, %s1205_s15 }
  0xb1   : > { %v299_v4 = vpop.xlane.xlu0 %298  ;;  %v322_v18 = vpop.xlane.xlu2 %321 }
  0xb2   : > { %v314_v6 = vmul.f32 %v312_v56, %v299_v4  ;;  %v305_v11 = vpop.xlane.xlu1 %304  ;;  %v399_v28 = vperm.slane %v322_v18, %v381_v3  ;;  %v498_v18 = vshra.s32 %v1417_v60, 4  ;;  %v521_v30 = vstv %s1470_s14  ;;  %s1639_s14 = sld [smem:[#allocation6 + $0x8]] }
  0xb3   : > { %v316_v23 = vmul.f32 %v312_v56, %v305_v11  ;;  %v1460_v56 = vshrl.u32 %v378_v53, 7 }
  0xb4   : > { %v382_v19 = vperm.slane %v314_v6, %v381_v3  ;;  %v400_v41 = vsel %vm383_vm1, %v399_v28, %v398_v27  ;;  %568 = vrot.lane.b32.xlu0 %v1430_v48, %s1203_s17  ;;  %570 = vrot.lane.b32.xlu2 %v1433_v49, %s1203_s17  ;;  %v475_v3 = vmul.f32 2.0, %v474_v59  ;;  %s1478_s17 = sld [smem:[#allocation6 + $0x1]]  ;;  %v553_v27 = vstv %s1468_s7 }
  0xb5   : > { %v390_v33 = vperm.slane %v316_v23, %v389_v22  ;;  %698 = vrot.lane.b32.xlu1 %v1430_v48, %s1207_s30  ;;  %1057 = vset.pattern.permute.xlu0 %v1460_v56  ;;  %v809_v57 = vadd.s32 16, %v1460_v56  ;;  %v803_v58 = vadd.s32 8, %v1460_v56  ;;  %v499_v23 = vshra.s32 %v1475_v16, 4  ;;  %s1628_s7 = sld [smem:[#allocation6 + $0x11]] }
  0xb6   : > { %v384_v29 = vsel %vm383_vm1, %v382_v19, %v380_v21  ;;  %v500_v19 = vand.u32 15, %v1417_v60  ;;  %vm1494_vm11 = vcmp.ge.s32.totalorder %v498_v18, 1 }
  0xb7   : > { %v388_v40 = vsel %vm387_vm3, %v386_v31, %v384_v29  ;;  %1059 = vset.pattern.permute.xlu1 %v809_v57  ;;  %1058 = vset.pattern.permute.xlu2 %v803_v58  ;;  %vm1509_vm14 = vcmp.ge.s32.totalorder %v499_v23, 1 }
  0xb8   : > { %v392_v46 = vsel %vm391_vm4, %v390_v33, %v388_v40  ;;  %vm1500_vm12 = vcmp.ge.s32.totalorder %v500_v19, 1  ;;  %vm1555_vm7 = vcmp.lt.s32.totalorder %v500_v19, 15  ;;  %v815_v33 = vadd.s32 24, %v1460_v56 }
  0xb9   : > { %v325_v34 = vpop.xlane.xlu0 %324  ;;  %v513_v62 = vpop.permute.xlu2 %512  ;;  %vm535_vm2 = vmand %vm1494_vm11, %vm1500_vm12 }
  0xba   : > { %v401_v35 = vperm.slane %v325_v34, %v385_v15  ;;  %v328_v36 = vpop.xlane.xlu1 %327  ;;  %v550_v37 = vstv %s1478_s17  ;;  %s285_s17 = scalar_lea.vmem [#allocation7], %s954_s23 }
  0xbb   : > { %v403_v42 = vperm.slane %v328_v36, %v389_v22  ;;  %s858_s23 = sshll.u32 %s285_s17, 4  ;;  %s859_s23 = int_to_ptr.vmem [resolvable:$true] %s858_s23 }
  0xbc   : > { %v402_v45 = vsel %vm387_vm3, %v401_v35, %v400_v41  ;;  %599 = vrot.lane.b32.xlu0 %v1433_v49, %s1204_s20  ;;  %642 = vrot.lane.b32.xlu2 %v1430_v48, %s1205_s15  ;;  %s1483_s20 = sld [smem:[#allocation6 + $0xb]] }
  0xbd   : > { %v404_v39 = vsel %vm391_vm4, %v403_v42, %v402_v45  ;;  %727 = vrot.lane.b32.xlu1 %v1433_v49, %s1208_s29  ;;  %s1490_s15 = sld [smem:[#allocation6 + $0x2]] }
  0xbe   : > { %v407_v47 = vsel %vm406_vm5, %v392_v46, %v404_v39  ;;  %vm536_vm5 = vmand %vm1509_vm14, %vm1517_vm15 }
  0xbf   : > { %957 = vmatmul.msk.f32.vlgmr.msra.gmra.mxu0 %vm416_vm6, %v407_v47 }
  0xc2   : > { %v580_v39 = vstv %s1483_s20  ;;  %s986_s20 = sshll.u32 %s1266_s25, 6  ;;  %s846_s25 = scalar_lea.sflag [#allocation4], %s1342_s28 }
  0xc4   : > { %669 = vrot.lane.b32.xlu0 %v1430_v48, %s1206_s19  ;;  %671 = vrot.lane.b32.xlu2 %v1433_v49, %s1206_s19  ;;  %s1505_s19 = sld [smem:[#allocation6 + $0xc]] }
  0xcc   : > { %700 = vrot.lane.b32.xlu0 %v1433_v49, %s1207_s30  ;;  %725 = vrot.lane.b32.xlu2 %v1430_v48, %s1208_s29  ;;  %s1526_s30 = sld [smem:[#allocation6 + $0x3]] }
  0xcd   : > { %s1532_s29 = sld [smem:[#allocation6 + $0xd]] }
  0xd2   : > { %v542_v12 = vpop.permute.xlu1 %541 }
  0xda   : > { %v598_v24 = vpop.permute.xlu1 %597 }
 0x106   : > { %v544_v13 = vpop.permute.xlu2 %543 }
 0x107   : > { %v546_v28 = vsel %vm545_vm10, %v542_v12, %v544_v13  ;;  %v547_v29 = vsel %vm545_vm10, %v544_v13, %v542_v12  ;;  %vm591_vm10 = vmand %vm1494_vm11, %vm1555_vm7 }
 0x108   : > { %v554_v38 = vmul.f32 %v553_v27, %v547_v29  ;;  %v555_v40 = vmul.f32 %v553_v27, %v546_v28 }
 0x10a   : > { %v558_v57 = vrot.slane %v554_v38, 1  ;;  %v559_v58 = vrot.slane %v555_v40, 1  ;;  %v606_v38 = vstv %s1526_s30  ;;  %s857_s30 = scalar_lea.hbm %s1738_s6, %s986_s20 }
 0x10e   : > { %v571_v25 = vpop.permute.xlu2 %570 }
 0x116   : > { %v643_v12 = vpop.permute.xlu2 %642 }
 0x11e   : > { %v515_v53 = vpop.permute.xlu0 %514 }
 0x11f   : > { %v517_v21 = vsel %vm516_vm9, %v513_v62, %v515_v53  ;;  %v518_v22 = vsel %vm516_vm9, %v515_v53, %v513_v62  ;;  %vm646_vm9 = vcmp.lt.s32.totalorder %v1417_v60, 127 }
 0x120   : > { %v525_v31 = vmul.f32 %v524_v20, %v518_v22  ;;  %v526_v32 = vmul.f32 %v524_v20, %v517_v21  ;;  %v522_v43 = vmul.f32 %v521_v30, %v518_v22  ;;  %v523_v44 = vmul.f32 %v521_v30, %v517_v21 }
 0x122   : > { %v529_v45 = vrot.slane %v525_v31, 1  ;;  %v530_v46 = vrot.slane %v526_v32, 1 }
 0x126   : > { %v569_v17 = vpop.permute.xlu0 %568 }
 0x127   : > { %v574_v47 = vsel %vm572_vm13, %v571_v25, %v569_v17 }
 0x12e   : > { %v600_v50 = vpop.permute.xlu0 %599 }
 0x13c   : > { %v437_v52 = vpop.f32.mrf.mxu0 }
 0x13d   : > { %v438_v54 = vadd.f32 %v1062_v51, %v437_v52  ;;  %v551_v52 = vmul.f32 %v550_v37, %v547_v29 }
 0x13f   : > { %v440_v55 = vmax.f32 %v438_v54, 0.0  ;;  %v552_v54 = vmul.f32 %v550_v37, %v546_v28  ;;  %v562_v20 = vadd.f32 %v558_v57, %v551_v52  ;;  %v626_v57 = vstv %s1542_s5 }
 0x141   : > { %959 = vmatmul.msk.f32.vlgmr.msra.gmra.mxu1 %vm442_vm8, %v440_v55  ;;  %v573_v55 = vsel %vm572_vm13, %v569_v17, %v571_v25  ;;  %v603_v17 = vsel %vm601_vm0, %v600_v50, %v598_v24  ;;  %v563_v21 = vadd.f32 %v559_v58, %v552_v54  ;;  %v602_v25 = vsel %vm601_vm0, %v598_v24, %v600_v50 }
 0x142   : > { %v582_v53 = vmul.f32 %v580_v39, %v573_v55  ;;  %vm1571_vm8 = vcmp.lt.s32.totalorder %v501_v26, 15  ;;  %v608_v54 = vmul.f32 %v606_v38, %v602_v25  ;;  %vm673_vm0 = vcmp.lt.s32.totalorder %v1417_v60, 113 }
 0x143   : > { %vm592_vm13 = vmand %vm1509_vm14, %vm1571_vm8 }
 0x144   : > { %v586_v31 = vrot.slane %v582_v53, 1 }
 0x1be   : > { %v467_v61 = vpop.f32.mrf.mxu1 }
 0x1bf   : > { %v471_v63 = vrot.slane %v467_v61, 1 }
 0x1c1   : > { %v473_v4 = vadd.f32 %v471_v63, %v467_v61  ;;  %v581_v63 = vmul.f32 %v580_v39, %v574_v47 }
 0x1c3   : > { %v476_v6 = vadd.f32 %v475_v3, %v473_v4  ;;  %v533_v3 = vadd.f32 %v529_v45, %v522_v43  ;;  %v534_v4 = vadd.f32 %v530_v46, %v523_v44  ;;  %v585_v28 = vrot.slane %v581_v63, 1  ;;  %v670_v44 = vpop.permute.xlu0 %669 }
 0x1c4   : > { %v564_v43 = vsel %vm1494_vm11, %v562_v20, 0.0  ;;  %v565_v45 = vsel %vm1509_vm14, %v563_v21, 0.0  ;;  %vm702_vm11 = vcmp.lt.s32.totalorder %v1417_v60, 112  ;;  %vm729_vm14 = vcmp.lt.s32.totalorder %v1417_v60, 111 }
 0x1c5   : > { %v960_v11 = vmul.f32 -1.442695, %v476_v6  ;;  %v577_v6 = vstv %s1490_s15 }
 0x1c6   : > { %v578_v27 = vmul.f32 %v577_v6, %v574_v47  ;;  %v579_v30 = vmul.f32 %v577_v6, %v573_v55  ;;  %v607_v47 = vmul.f32 %v606_v38, %v603_v17 }
 0x1c7   : > { %1067 = vpow2.f32 %v960_v11  ;;  %v645_v11 = vpop.permute.xlu1 %644 }
 0x1c8   : > { %v589_v39 = vadd.f32 %v585_v28, %v578_v27  ;;  %v590_v26 = vadd.f32 %v586_v31, %v579_v30 }
 0x1cb   : > { %v701_v31 = vpop.permute.xlu0 %700 }
 0x1cd   : > { %v1068_v14 = vpop.eup %1067 }
 0x1ce   : > { %v1472_v15 = vadd.f32 1.0, %v1068_v14  ;;  %v609_v14 = vstv %s1505_s19 }
 0x1cf   : > { %v610_v32 = vmul.f32 %v609_v14, %v603_v17  ;;  %v611_v40 = vmul.f32 %v609_v14, %v602_v25  ;;  %v699_v63 = vpop.permute.xlu1 %698  ;;  %v651_v17 = vstv %s1560_s11  ;;  %v628_v25 = vmul.f32 %v626_v57, %v1433_v49 }
 0x1d0   : > { %1069 = vrcp.f32 %v1472_v15  ;;  %v492_v59 = vand.u32 2147483648, %v1472_v15  ;;  %v490_v62 = vand.u32 2147483647, %v1472_v15  ;;  %vm486_vm3 = vweird.f32 %v1472_v15 }
 0x1d1   : > { %v614_v50 = vrot.slane %v610_v32, 1  ;;  %v615_v55 = vrot.slane %v611_v40, 1 }
 0x1d2   : > { %v493_v22 = vor.u32 1.1754944e-38, %v492_v59  ;;  %vm491_vm6 = vcmp.eq.f32.partialorder %v490_v62, 8.507059e+37  ;;  %v654_v59 = vstv %s1547_s8  ;;  %v648_v62 = vsel %vm646_vm9, %v645_v11, %v643_v12 }
 0x1d3   : > { %v619_v14 = vadd.f32 %v615_v55, %v608_v54  ;;  %v656_v21 = vmul.f32 %v654_v59, %v648_v62  ;;  %v653_v30 = vmul.f32 %v651_v17, %v648_v62 }
 0x1d5   : > { %v621_v32 = vsel %vm1517_vm15, %v619_v14, 0.0  ;;  %v660_v38 = vrot.slane %v656_v21, 1 }
 0x1d6   : > { %v1070_v35 = vpop.eup %1069 }
 0x1d7   : > { %v482_v41 = vmul.f32 %v1070_v35, %v1472_v15  ;;  %vm487_vm1 = vweird.f32 %v1070_v35  ;;  %v664_v55 = vadd.f32 %v660_v38, %v653_v30 }
 0x1d8   : > { %vm488_vm4 = vmor %vm486_vm3, %vm487_vm1  ;;  %vm1650_vm1 = vcmp.lt.s32.totalorder %v498_v18, 15 }
 0x1d9   : > { %v483_v51 = vsub.f32 1.0, %v482_v41  ;;  %v538_v41 = vsel %vm536_vm5, %v534_v4, 0.0  ;;  %v593_v4 = vsel %vm591_vm10, %v589_v39, 0.0  ;;  %v703_v39 = vsel %vm702_vm11, %v699_v63, %v701_v31  ;;  %vm692_vm3 = vmand %vm1650_vm1, %vm1500_vm12 }
 0x1da   : > { %v567_v58 = vadd.f32 %v565_v45, %v538_v41  ;;  %v710_v45 = vstv %s1610_s12 }
 0x1db   : > { %v484_v61 = vmul.f32 %v1070_v35, %v483_v51  ;;  %v629_v51 = vstv %s1532_s29  ;;  %v711_v62 = vmul.f32 %v710_v45, %v703_v39  ;;  %s860_s29 = sshll.u32 %s857_s30, 4  ;;  %s861_s29 = int_to_ptr.hbm [resolvable:$true] %s860_s29 }
 0x1dc   : > { %v630_v6 = vmul.f32 %v629_v51, %v1430_v48  ;;  %v631_v53 = vmul.f32 %v629_v51, %v1433_v49  ;;  %v728_v51 = vpop.permute.xlu1 %727  ;;  %s1138_s5 = sshra.s32 %s861_s29, 4  ;;  %s1139_s5 = int_to_ptr.hbm [resolvable:$true] %s1138_s5 }
 0x1dd   : > { %v485_v13 = vadd.f32 %v1070_v35, %v484_v61  ;;  %v647_v61 = vsel %vm646_vm9, %v643_v12, %v645_v11  ;;  %v594_v11 = vsel %vm592_vm13, %v590_v26, 0.0  ;;  %v618_v12 = vadd.f32 %v614_v50, %v607_v47  ;;  %s1140_s8 = scalar_lea.hbm %s1139_s5, 64  ;;  %p1145_p0 = scmp.lt.s32.totalorder %s1139_s5, %s1738_s6 }
 0x1de   : > { %v655_v20 = vmul.f32 %v654_v59, %v647_v61  ;;  %v596_v27 = vadd.f32 %v594_v11, %v567_v58  ;;  %v634_v28 = vrot.slane %v630_v6, 1  ;;  %v635_v56 = vrot.slane %v631_v53, 1  ;;  %p1141_p4 = scmp.ne.s32.totalorder %s1139_s5, %s1140_s8 }
 0x1df   : > { %v489_v15 = vsel %vm488_vm4, %v1070_v35, %v485_v13  ;;  %v537_v35 = vsel %vm535_vm2, %v533_v3, 0.0  ;;  %v672_v3 = vpop.permute.xlu2 %671  ;;  %v627_v13 = vmul.f32 %v626_v57, %v1430_v48  ;;  %v652_v49 = vmul.f32 %v651_v17, %v647_v61 }
 0x1e0   : > { %v494_v29 = vsel %vm491_vm6, %v493_v22, %v489_v15  ;;  %v566_v52 = vadd.f32 %v564_v43, %v537_v35  ;;  %v681_v15 = vstv %s1575_s16  ;;  %v674_v36 = vsel %vm673_vm0, %v670_v44, %v672_v3  ;;  %p1142_p6 = pnand %p1141_p4, %p1297_p11 }
 0x1e1   : > { %v496_v37 = vmul.f32 0.5, %v494_v29  ;;  %v675_v48 = vsel %vm673_vm0, %v672_v3, %v670_v44  ;;  %v620_v29 = vsel %vm1500_vm12, %v618_v12, 0.0  ;;  %v682_v40 = vmul.f32 %v681_v15, %v674_v36  ;;  %vm748_vm12 = vmand %vm1650_vm1, %vm1555_vm7 }
 0x1e2   : > { %v595_v22 = vadd.f32 %v593_v4, %v566_v52  ;;  %v678_v35 = vstv %s1600_s26  ;;  %v683_v41 = vmul.f32 %v681_v15, %v675_v48  ;;  %v638_v43 = vadd.f32 %v634_v28, %v627_v13  ;;  %p1143_p13 = pneg %p1142_p6  ;;  %s1144_s26 = scalar_lea.hbm %s1738_s6, 128 }
 0x1e3   : > { %v1579_v46 = vperm.slane %v496_v37, 0  ;;  %v659_v37 = vrot.slane %v655_v20, 1  ;;  %v639_v44 = vadd.f32 %v635_v56, %v628_v25  ;;  %v623_v47 = vadd.f32 %v621_v32, %v596_v27  ;;  %p1146_p3 = scmp.lt.s32.totalorder %s1144_s26, %s1140_s8 }
 0x1e4   : > { %v622_v26 = vadd.f32 %v620_v29, %v595_v22  ;;  %v704_v50 = vsel %vm702_vm11, %v701_v31, %v699_v63  ;;  %v679_v57 = vmul.f32 %v678_v35, %v674_v36  ;;  %v686_v58 = vrot.slane %v682_v40, 1 }
 0x1e5   : > { %811 = vperm.xlu1 %1059, %v1579_v46   ;;  %805 = vperm.xlu2 %1058, %v1579_v46   ;;  %v663_v54 = vadd.f32 %v659_v37, %v652_v49  ;;  %v680_v59 = vmul.f32 %v678_v35, %v675_v48  ;;  %v687_v61 = vrot.slane %v683_v41, 1  ;;  %v707_v3 = vstv %s1624_s13  ;;  %p1147_p5 = por %p1146_p3, %p1145_p0 }
 0x1e6   : > { %799 = vperm.xlu0 %1057, %v1579_v46   ;;  %v712_v4 = vmul.f32 %v710_v45, %v704_v50  ;;  %v737_v6 = vstv %s1628_s7  ;;  %v640_v11 = vadd.f32 %v638_v43, %v622_v26  ;;  %vm1656_vm2 = vcmp.lt.s32.totalorder %v499_v23, 15 }
 0x1e7   : > { %v726_v52 = vpop.permute.xlu2 %725  ;;  %v641_v13 = vadd.f32 %v639_v44, %v623_v47  ;;  %v665_v14 = vsel %vm1555_vm7, %v663_v54, 0.0  ;;  %v666_v17 = vsel %vm1571_vm8, %v664_v55, 0.0  ;;  %v690_v18 = vadd.f32 %v686_v58, %v679_v57  ;;  %vm693_vm4 = vmand %vm1656_vm2, %vm1517_vm15  ;;  %p1148_p8 = pnand %p1147_p5, %p1143_p13 }
 0x1e8   : > { %v730_v53 = vsel %vm729_vm14, %v726_v52, %v728_v51  ;;  %v731_v12 = vsel %vm729_vm14, %v728_v51, %v726_v52  ;;  %v691_v20 = vadd.f32 %v687_v61, %v680_v59  ;;  %v708_v21 = vmul.f32 %v707_v3, %v703_v39  ;;  %vm749_vm15 = vmand %vm1656_vm2, %vm1571_vm8 }
 0x1e9   : > { %v715_v16 = vrot.slane %v711_v62, 1  ;;  %v738_v23 = vmul.f32 %v737_v6, %v730_v53  ;;  %v709_v60 = vmul.f32 %v707_v3, %v704_v50  ;;  %v716_v22 = vrot.slane %v712_v4, 1 }
 0x1ea   : > { %v734_v25 = vstv %s1639_s14  ;;  %v739_v15 = vmul.f32 %v737_v6, %v731_v12  ;;  %v668_v36 = vadd.f32 %v666_v17, %v641_v13  ;;  %v694_v27 = vsel %vm692_vm3, %v690_v18, 0.0 }
 0x1eb   : > { %v719_v28 = vadd.f32 %v715_v16, %v708_v21  ;;  %v735_v56 = vmul.f32 %v734_v25, %v730_v53  ;;  %v742_v48 = vrot.slane %v738_v23, 1  ;;  %v695_v29 = vsel %vm693_vm4, %v691_v20, 0.0 }
 0x1ec   : > { %v720_v34 = vadd.f32 %v716_v22, %v709_v60  ;;  %v736_v49 = vmul.f32 %v734_v25, %v731_v12  ;;  %v743_v30 = vrot.slane %v739_v15, 1  ;;  %v697_v32 = vadd.f32 %v695_v29, %v668_v36 }
 0x1ed   : > { %1060 = vset.pattern.permute.xlu2 %v815_v33  ;;  %v721_v37 = vsel %vm1650_vm1, %v719_v28, 0.0  ;;  %v746_v38 = vadd.f32 %v742_v48, %v735_v56 }
 0x1ee   : > { %1061 = vset.pattern.permute.xlu0 %v815_v33  ;;  %v722_v42 = vsel %vm1656_vm2, %v720_v34, 0.0  ;;  %v747_v40 = vadd.f32 %v743_v30, %v736_v49 }
 0x1ef   : > { %v724_v41 = vadd.f32 %v722_v42, %v697_v32  ;;  %v750_v43 = vsel %vm748_vm12, %v746_v38, 0.0 }
 0x1f0   : > { %v751_v44 = vsel %vm749_vm15, %v747_v40, 0.0 }
 0x1f1   : > { %v753_v39 = vadd.f32 %v751_v44, %v724_v41 }
 0x1f3   : > { %v979_v47 = vmul.f32 -1.442695, %v753_v39 }
 0x1f5   : > { %817 = vperm.xlu2 %1060, %v1579_v46   ;;  %v667_v46 = vadd.f32 %v665_v14, %v640_v11 }
 0x1f7   : > { %v696_v31 = vadd.f32 %v694_v27, %v667_v46 }
 0x1f9   : > { %v723_v35 = vadd.f32 %v721_v37, %v696_v31 }
 0x1fb   : > { %v752_v45 = vadd.f32 %v750_v43, %v723_v35 }
 0x1fd   : > { %v978_v26 = vmul.f32 -1.442695, %v752_v45 }
 0x1ff   : > { %1071 = vpow2.f32 %v978_v26 }
 0x200   : > { %1073 = vpow2.f32 %v979_v47 }
 0x205   : > { %v1072_v24 = vpop.eup %1071 }
 0x206   : > { %v1074_v50 = vpop.eup %1073  ;;  %v760_v51 = vadd.f32 1.0, %v1072_v24 }
 0x207   : > { %v761_v52 = vadd.f32 1.0, %v1074_v50 }
 0x208   : > { %1075 = vrcp.f32 %v760_v51  ;;  %vm767_vm5 = vweird.f32 %v760_v51  ;;  %v773_v3 = vand.u32 2147483648, %v760_v51  ;;  %v771_v53 = vand.u32 2147483647, %v760_v51 }
 0x209   : > { %1077 = vrcp.f32 %v761_v52  ;;  %vm782_vm7 = vweird.f32 %v761_v52  ;;  %v788_v4 = vand.u32 2147483648, %v761_v52  ;;  %v786_v63 = vand.u32 2147483647, %v761_v52 }
 0x20a   : > { %v774_v33 = vor.u32 1.1754944e-38, %v773_v3  ;;  %vm772_vm13 = vcmp.eq.f32.partialorder %v771_v53, 8.507059e+37 }
 0x20b   : > { %v789_v12 = vor.u32 1.1754944e-38, %v788_v4  ;;  %vm787_vm0 = vcmp.eq.f32.partialorder %v786_v63, 8.507059e+37 }
 0x20e   : > { %v1076_v19 = vpop.eup %1075 }
 0x20f   : > { %v1078_v54 = vpop.eup %1077  ;;  %v763_v55 = vmul.f32 %v1076_v19, %v760_v51  ;;  %vm768_vm6 = vweird.f32 %v1076_v19 }
 0x210   : > { %v778_v57 = vmul.f32 %v1078_v54, %v761_v52  ;;  %vm783_vm8 = vweird.f32 %v1078_v54  ;;  %vm769_vm9 = vmor %vm767_vm5, %vm768_vm6 }
 0x211   : > { %v764_v58 = vsub.f32 1.0, %v763_v55  ;;  %vm784_vm10 = vmor %vm782_vm7, %vm783_vm8 }
 0x212   : > { %v779_v59 = vsub.f32 1.0, %v778_v57 }
 0x213   : > { %v765_v61 = vmul.f32 %v1076_v19, %v764_v58 }
 0x214   : > { %v780_v62 = vmul.f32 %v1078_v54, %v779_v59 }
 0x215   : > { %v766_v6 = vadd.f32 %v1076_v19, %v765_v61 }
 0x216   : > { %v781_v11 = vadd.f32 %v1078_v54, %v780_v62 }
 0x217   : > { %v770_v13 = vsel %vm769_vm9, %v1076_v19, %v766_v6 }
 0x218   : > { %v785_v14 = vsel %vm784_vm10, %v1078_v54, %v781_v11  ;;  %v775_v17 = vsel %vm772_vm13, %v774_v33, %v770_v13 }
 0x219   : > { %v790_v18 = vsel %vm787_vm0, %v789_v12, %v785_v14  ;;  %v792_v20 = vmul.f32 0.5, %v775_v17 }
 0x21a   : > { %v793_v21 = vmul.f32 0.5, %v790_v18 }
 0x21b   : > { %v819_v16 = vperm.slane %v792_v20, 0 }
 0x21c   : > { %v820_v23 = vperm.slane %v793_v21, 0 }
 0x23f   : > { %v806_v60 = vpop.permute.xlu2 %805 }
 0x240   : > { %v823_v22 = vadd.f32 %v819_v16, %v806_v60  ;;  %v824_v25 = vadd.f32 %v820_v23, %v806_v60 }
 0x242   : > { %v831_v15 = vmul.f32 %v823_v22, %v1370_v7  ;;  %v832_v46 = vmul.f32 %v824_v25, %v1372_v8 }
 0x244   : > { %839 = vst [vmem:[%s285_s17 + $0x10] sm:$0xff] %v831_v15 }
 0x245   : > { %840 = vst [vmem:[%s285_s17 + $0x18] sm:$0xff] %v832_v46 }
 0x24f   : > { %v818_v36 = vpop.permute.xlu2 %817 }
 0x250   : > { %v827_v27 = vadd.f32 %v819_v16, %v818_v36  ;;  %v828_v28 = vadd.f32 %v820_v23, %v818_v36 }
 0x252   : > { %v835_v56 = vmul.f32 %v827_v27, %v1374_v9  ;;  %v836_v48 = vmul.f32 %v828_v28, %v1376_v10 }
 0x254   : > { %843 = vst [vmem:[%s285_s17 + $0x30] sm:$0xff] %v835_v56 }
 0x255   : > { %844 = vst [vmem:[%s285_s17 + $0x38] sm:$0xff] %v836_v48 }
 0x257   : > { %v812_v29 = vpop.permute.xlu1 %811 }
 0x258   : > { %v825_v7 = vadd.f32 %v819_v16, %v812_v29  ;;  %v826_v8 = vadd.f32 %v820_v23, %v812_v29  ;;  %v800_v34 = vpop.permute.xlu0 %799 }
 0x259   : > { %v821_v49 = vadd.f32 %v819_v16, %v800_v34  ;;  %v822_v30 = vadd.f32 %v820_v23, %v800_v34 }
 0x25a   : > { %v833_v31 = vmul.f32 %v825_v7, %v1360_v2  ;;  %v834_v9 = vmul.f32 %v826_v8, %v1366_v5 }
 0x25b   : > { %v829_v10 = vmul.f32 %v821_v49, %v1356_v0  ;;  %v830_v32 = vmul.f32 %v822_v30, %v1358_v1 }
 0x25c   : > { %841 = vst [vmem:[%s285_s17 + $0x20] sm:$0xff] %v833_v31 }
 0x25d   : > { %842 = vst [vmem:[%s285_s17 + $0x28] sm:$0xff] %v834_v9 }
 0x25e   : > { %837 = vst [vmem:[%s285_s17] sm:$0xff] %v829_v10 }
 0x25f   : > { %838 = vst [vmem:[%s285_s17 + $0x8] sm:$0xff] %v830_v32 }
 0x260   : > { %1151 = shalt.err (!%p1148_p8)
}
 0x261   : > { %s1209_s28 = smov 256  }
 0x262   : > { %993 = dma.vmem_to_hbm [thread:$0]  (%p1297_p11), %s859_s23, 1024, %s861_s29, %s846_s25, %s1209_s28, %s1209_s28, %s1202_s18  }
 0x263 PF: > { %s875_s7 = sand.u32 1, %s1182_s21   ;;  %p1766_p9 = scmp.ge.s32.totalorder %s1194_s24, 2 }
 0x264   : > { %s876_s14 = scalar_lea.sflag [#allocation4], %s875_s7 }
 0x265   : > { %p1004_p10 = pnand %p1766_p9, %p1301_p12 }
 0x267   : > { %p1005_p1 = pneg %p1004_p10 }
 0x269   : > { %1177 = dma.done.wait (%p1005_p1), %s876_s14, 1024  }
 0x26a   : > { %1179 = vsyncadd (%p1005_p1), %s876_s14, 4294966272  ;;  %s1767_s17 = sld [smem:[#allocation11_spill]]  ;;  %p20_p2 = scmp.ge.s32.totalorder %s1270_s27, 4  }
 0x26b   : > { %s1768_s23 = sld [smem:[#allocation12_spill]]  ;;  %s1769_s21 = smov %s1186_s22 }
 0x26c   : > { %s1771_s24 = smov %s1270_s27  ;;  %22 = sbr.rel (!%p20_p2) target bundleno = 8 (0x8), region = 94 }
 0x270   : > { %s1770_s22 = smov %s1767_s17 }
 0x271   :  { %882 = vsyncpa [#allocation3], 1 }
 0x272   :  { %884 = vsyncpa [#allocation3 + $0x1], 1 }
 0x273   :  { %885 = vsyncpa [#allocation4], 1 }
 0x274   :  { %887 = vsyncpa [#allocation4 + $0x1], 1 }
 0x275   :  { %888 = vsyncpa [#allocation5], 1 }
 0x276   :  { %890 = vsyncpa [#allocation5 + $0x1], 1 }

</bundles_post_ra>
